<compile_context>
chip_gen: v5e
topology: v5e:2x2
jax: 0.10.0
libtpu: 0.0.40
codegen_flags: <defaults>
</compile_context>

<pallas_src>
import functools

import jax
import jax.numpy as jnp
from jax.experimental import pallas as pl
from jax.experimental.pallas import tpu as pltpu


def _mhfa_pool_kernel(kv_ref, wka_ref, bka_ref, wv_ref, bv_ref, pooled_ref,
                      *, tb, t):
    # kv_ref     : (2, TB*T, D) bf16   packed layer-weighted k (slot 0) / v (slot 1)
    # wka_ref    : (D, H)       bf16   folded Wk @ Wa
    # bka_ref    : (1, H)       f32    folded bk @ Wa + ba
    # wv_ref     : (D, C)       bf16
    # bv_ref     : (1, C)       f32
    # pooled_ref : (TB, H, C)   f32
    k = kv_ref[0]                                   # (TB*T, D) bf16
    v = kv_ref[1]                                   # (TB*T, D) bf16

    att = jnp.dot(k, wka_ref[...],
                  preferred_element_type=jnp.float32) + bka_ref[...]   # (TB*T, H)
    v_c = jnp.dot(v, wv_ref[...],
                  preferred_element_type=jnp.float32) + bv_ref[...]    # (TB*T, C)

    h = att.shape[-1]
    c = v_c.shape[-1]
    # Un-flatten the batch dim.  T is a multiple of the 8-sublane tile
    # (asserted in the wrapper), so these reshapes are layout-preserving.
    att = att.reshape(tb, t, h)
    v_c = v_c.reshape(tb, t, c)

    # Softmax over the time axis (axis=1), per batch element.
    m = jnp.max(att, axis=1, keepdims=True)
    e = jnp.exp(att - m)
    s = jnp.sum(e, axis=1, keepdims=True)
    # approx reciprocal: ~1e-3 relative error, intentional (EUP slot is free
    # in this HBM-bound kernel); well inside the bf16-driven test tolerance.
    att = e * pl.reciprocal(s, approx=True)

    # pooled[b, h, c] = sum_t att[b, t, h] * v_c[b, t, c]
    # bf16 operands (flash-attention style) with f32 accumulation.
    pooled_ref[...] = jax.lax.dot_general(
        att.astype(jnp.bfloat16), v_c.astype(jnp.bfloat16),
        dimension_numbers=(((1,), (1,)), ((0,), (0,))),
        preferred_element_type=jnp.float32)


def _default_vmem_limit_bytes():
    """v5e/v6e have 128 MiB physical VMEM -> allow 64 MiB scoped so larger row
    tiles fit; anything else (incl. v7x's 64 MiB physical) stays at 32 MiB."""
    try:
        kind = jax.devices()[0].device_kind.lower()
    except Exception:
        return 32 * 1024 * 1024
    if "v5" in kind or "v6" in kind:
        return 64 * 1024 * 1024
    return 32 * 1024 * 1024


def _pick_batch_tile(batch, t, *, target_rows=1024, min_steps=8):
    """Choose TB (batch elements per grid step).

    Goals (perf review): rows = TB*T as large as possible up to target_rows
    (amortize the ~0.35us per-step cost, approach the HBM roofline), but keep
    at least `min_steps` grid steps so the software pipeline has tiles to
    prefetch and v7x's two TensorCores each get >= 4 steps.  TB*T must stay a
    multiple of 8 (sublane tile) so blocks/reshapes are layout-preserving.
    """
    divisors = [d for d in range(1, batch + 1) if batch % d == 0]
    for steps in (min_steps, 4, 2, 1):
        cands = [d for d in divisors
                 if (d * t) % 8 == 0
                 and batch // d >= steps
                 and d * t <= max(target_rows, t)]
        if cands:
            return max(cands)
    return 1


def mhfa_pallas(x_bdtl, params, *, batch_tile=None):
    """x_bdtl: (B, D, T, L) float32 in the PyTorch layout.  Returns (B, O)."""
    B, D, T, L = x_bdtl.shape
    # TODO(synk): pad T to a multiple of 8 to support arbitrary sequence lengths.
    assert T % 8 == 0, "MHFA Pallas kernel requires T % 8 == 0 (sublane tile)"

    Wk, bk = params["Wk"], params["bk"]       # (D, C), (C,)
    Wv, bv = params["Wv"], params["bv"]       # (D, C), (C,)
    Wa, ba = params["Wa"], params["ba"]       # (C, H), (H,)
    Wp, bp = params["Wp"], params["bp"]       # (H*C, O), (O,)
    C = Wv.shape[1]
    H = Wa.shape[1]

    vmem_limit = _default_vmem_limit_bytes()
    # Rough per-row VMEM budget: double-buffered bf16 k/v block (2 bufs x 2
    # tensors x D x 2B) plus f32/bf16 intermediates ~ (2H + 3C) * 4B.
    bytes_per_row = 8 * D + 4 * (2 * H + 3 * C)
    row_cap = max(T, (vmem_limit // 2) // max(bytes_per_row, 1))
    target_rows = max(T, min(2048, row_cap))

    if batch_tile is not None:
        tb = batch_tile
        assert B % tb == 0, "batch tile must divide batch"
        assert (tb * T) % 8 == 0
    else:
        tb = _pick_batch_tile(B, T, target_rows=target_rows)
    rows = tb * T
    grid = (B // tb,)

    # ---- layer-weighted sums as ONE dot_general on the native (B,D,T,L)
    #      layout: x is read from HBM once; one whole-array bf16 cast (no
    #      per-tensor slice+convert passes); reshape to (2, B*T, D) is free.
    wl = jnp.stack([jax.nn.softmax(params["weights_k"]),
                    jax.nn.softmax(params["weights_v"])], axis=1)      # (L, 2)
    kv = jnp.einsum("bdtl,lk->kbtd", x_bdtl, wl)                       # (2, B, T, D) f32
    kv = kv.astype(jnp.bfloat16).reshape(2, B * T, D)                  # kernel input

    # ---- fold Wk into the attention head: (k@Wk+bk)@Wa+ba == k@Wka + bka ----
    wka = (Wk @ Wa).astype(jnp.bfloat16)                               # (D, H)
    bka = (bk @ Wa + ba).reshape(1, H).astype(jnp.float32)
    wv_b = Wv.astype(jnp.bfloat16)
    bv_r = bv.reshape(1, C).astype(jnp.float32)

    kernel = functools.partial(_mhfa_pool_kernel, tb=tb, t=T)

    pooled = pl.pallas_call(
        kernel,
        out_shape=jax.ShapeDtypeStruct((B, H, C), jnp.float32),
        grid=grid,
        in_specs=[
            pl.BlockSpec((2, rows, D), lambda i: (0, i, 0)),   # packed k/v
            pl.BlockSpec((D, H), lambda i: (0, 0)),            # Wka
            pl.BlockSpec((1, H), lambda i: (0, 0)),            # bka
            pl.BlockSpec((D, C), lambda i: (0, 0)),            # Wv
            pl.BlockSpec((1, C), lambda i: (0, 0)),            # bv
        ],
        out_specs=pl.BlockSpec((tb, H, C), lambda i: (i, 0, 0)),
        compiler_params=pltpu.CompilerParams(
            dimension_semantics=("parallel",),
            vmem_limit_bytes=vmem_limit,
        ),
    )(kv, wka, bka, wv_b, bv_r)

    # ---- final projection at full batch as a single XLA GEMM.  pooled is
    #      tiny (~H*C*4 bytes/elem) vs the k/v traffic, so this round trip is
    #      negligible; keeping it outside avoids an in-kernel (tb,H,C)->(tb,H*C)
    #      relayout.
    return pooled.reshape(B, H * C) @ Wp + bp


def mhfa_reference(x_bdtl, params):
    """Pure-JAX (f32) reference mirroring the PyTorch forward exactly."""
    wk = jax.nn.softmax(params["weights_k"])
    wv = jax.nn.softmax(params["weights_v"])
    k = jnp.sum(x_bdtl * wk, axis=-1).transpose(0, 2, 1)   # (B, T, D)
    v = jnp.sum(x_bdtl * wv, axis=-1).transpose(0, 2, 1)   # (B, T, D)
    k = k @ params["Wk"] + params["bk"]                    # (B, T, C)
    v = v @ params["Wv"] + params["bv"]                    # (B, T, C)
    att = jax.nn.softmax(k @ params["Wa"] + params["ba"], axis=1)  # (B, T, H)
    pooled = jnp.einsum("bth,btc->bhc", att, v)            # (B, H, C)
    pooled = pooled.reshape(x_bdtl.shape[0], -1)
    return pooled @ params["Wp"] + params["bp"]


if __name__ == "__main__":
    # Small shapes consistent with the module: real head_nb=8, real
    # compression_dim=128 (so the (tb,H,C) out block is exactly one (8,128)
    # tile -> dense stores), 13 layers; scaled-down batch / inputs_dim /
    # seq-len / outputs_dim.
    B, D, T, L = 32, 64, 16, 13     # batch, inputs_dim, seq len, layers
    C, H, O = 128, 8, 64            # compression_dim, head_nb, outputs_dim

    key = jax.random.PRNGKey(0)
    kx, k1, k2, k3, k4, k5, k6, k7, k8 = jax.random.split(key, 9)

    x = jax.random.normal(kx, (B, D, T, L), dtype=jnp.float32)

    params = {
        # module init: torch.ones(13)
        "weights_k": jnp.ones((L,), jnp.float32),
        "weights_v": jnp.ones((L,), jnp.float32),
        # Linear weights stored pre-transposed as (in, out)
        "Wk": 0.1 * jax.random.normal(k1, (D, C), dtype=jnp.float32),
        "bk": 0.1 * jax.random.normal(k2, (C,), dtype=jnp.float32),
        "Wv": 0.1 * jax.random.normal(k3, (D, C), dtype=jnp.float32),
        "bv": 0.1 * jax.random.normal(k4, (C,), dtype=jnp.float32),
        "Wa": 0.1 * jax.random.normal(k5, (C, H), dtype=jnp.float32),
        "ba": 0.1 * jax.random.normal(k6, (H,), dtype=jnp.float32),
        "Wp": 0.1 * jax.random.normal(k7, (H * C, O), dtype=jnp.float32),
        "bp": 0.1 * jax.random.normal(k8, (O,), dtype=jnp.float32),
    }

    out = jax.block_until_ready(mhfa_pallas(x, params))
    ref = mhfa_reference(x, params)

    assert out.shape == (B, O)
    # bf16 k/v + bf16 pooling operands + approx reciprocal -> relaxed tolerance.
    err = float(jnp.max(jnp.abs(out - ref)))
    assert jnp.allclose(out, ref, atol=2e-2, rtol=2e-2), err

    print("KERNEL_OK")
</pallas_src>

<mosaic_0001>
module attributes {stable_mosaic.version = 11 : i64} {
  func.func @_mhfa_pool_kernel(%arg0: i32, %arg1: memref<2x64x64xbf16, #tpu.memory_space<vmem>>, %arg2: memref<64x8xbf16, #tpu.memory_space<vmem>>, %arg3: memref<1x8xf32, #tpu.memory_space<vmem>>, %arg4: memref<64x128xbf16, #tpu.memory_space<vmem>>, %arg5: memref<1x128xf32, #tpu.memory_space<vmem>>, %arg6: memref<4x8x128xf32, #tpu.memory_space<vmem>>) attributes {dimension_semantics = [#tpu.dimension_semantics<parallel>], iteration_bounds = array<i64: 8>, scalar_prefetch = 0 : i64, scratch_operands = 0 : i64, tpu.core_type = #tpu.core_type<tc>, window_params = [{transform_indices = @transform_0, window_bounds = array<i64: 2, 64, 64>}, {pipeline_mode = #tpu.pipeline_mode<synchronous>, transform_indices = @transform_1, window_bounds = array<i64: 64, 8>}, {pipeline_mode = #tpu.pipeline_mode<synchronous>, transform_indices = @transform_2, window_bounds = array<i64: 1, 8>}, {pipeline_mode = #tpu.pipeline_mode<synchronous>, transform_indices = @transform_3, window_bounds = array<i64: 64, 128>}, {pipeline_mode = #tpu.pipeline_mode<synchronous>, transform_indices = @transform_4, window_bounds = array<i64: 1, 128>}, {transform_indices = @transform_5, window_bounds = array<i64: 4, 8, 128>}]} {
    %c0 = arith.constant 0 : index
    %c0_0 = arith.constant 0 : index
    %c0_1 = arith.constant 0 : index
    %0 = vector.load %arg1[%c0, %c0_0, %c0_1] : memref<2x64x64xbf16, #tpu.memory_space<vmem>>, vector<1x64x64xbf16>
    %1 = vector.shape_cast %0 : vector<1x64x64xbf16> to vector<64x64xbf16>
    %c1 = arith.constant 1 : index
    %c0_2 = arith.constant 0 : index
    %c0_3 = arith.constant 0 : index
    %2 = vector.load %arg1[%c1, %c0_2, %c0_3] : memref<2x64x64xbf16, #tpu.memory_space<vmem>>, vector<1x64x64xbf16>
    %3 = vector.shape_cast %2 : vector<1x64x64xbf16> to vector<64x64xbf16>
    %c0_4 = arith.constant 0 : index
    %c0_5 = arith.constant 0 : index
    %4 = vector.load %arg2[%c0_4, %c0_5] : memref<64x8xbf16, #tpu.memory_space<vmem>>, vector<64x8xbf16>
    %cst = arith.constant dense<0.000000e+00> : vector<64x8xf32>
    %5 = tpu.matmul %1, %4, %cst {dimension_numbers = #tpu.dot_dimension_numbers<[1], [0], [0], [1], [0, 0, 1, 1], [], []>} : vector<64x64xbf16>, vector<64x8xbf16>, vector<64x8xf32> -> vector<64x8xf32>
    %c0_6 = arith.constant 0 : index
    %c0_7 = arith.constant 0 : index
    %6 = vector.load %arg3[%c0_6, %c0_7] : memref<1x8xf32, #tpu.memory_space<vmem>>, vector<1x8xf32>
    %7 = vector.broadcast %6 : vector<1x8xf32> to vector<64x8xf32>
    %8 = arith.addf %5, %7 : vector<64x8xf32>
    %c0_8 = arith.constant 0 : index
    %c0_9 = arith.constant 0 : index
    %9 = vector.load %arg4[%c0_8, %c0_9] : memref<64x128xbf16, #tpu.memory_space<vmem>>, vector<64x128xbf16>
    %cst_10 = arith.constant dense<0.000000e+00> : vector<64x128xf32>
    %10 = tpu.matmul %3, %9, %cst_10 {dimension_numbers = #tpu.dot_dimension_numbers<[1], [0], [0], [1], [0, 0, 1, 1], [], []>} : vector<64x64xbf16>, vector<64x128xbf16>, vector<64x128xf32> -> vector<64x128xf32>
    %c0_11 = arith.constant 0 : index
    %c0_12 = arith.constant 0 : index
    %11 = vector.load %arg5[%c0_11, %c0_12] : memref<1x128xf32, #tpu.memory_space<vmem>>, vector<1x128xf32>
    %12 = vector.broadcast %11 : vector<1x128xf32> to vector<64x128xf32>
    %13 = arith.addf %10, %12 : vector<64x128xf32>
    %14 = vector.shape_cast %8 : vector<64x8xf32> to vector<4x16x8xf32>
    %15 = vector.shape_cast %13 : vector<64x128xf32> to vector<4x16x128xf32>
    %cst_13 = arith.constant dense<0xFF800000> : vector<4x8xf32>
    %16 = vector.multi_reduction <maximumf>, %14, %cst_13 [1] : vector<4x16x8xf32> to vector<4x8xf32>
    %17 = vector.shape_cast %16 : vector<4x8xf32> to vector<4x1x8xf32>
    %18 = vector.broadcast %17 : vector<4x1x8xf32> to vector<4x16x8xf32>
    %19 = arith.subf %14, %18 : vector<4x16x8xf32>
    %20 = math.exp %19 : vector<4x16x8xf32>
    %cst_14 = arith.constant dense<0.000000e+00> : vector<4x8xf32>
    %21 = vector.multi_reduction <add>, %20, %cst_14 [1] : vector<4x16x8xf32> to vector<4x8xf32>
    %22 = vector.shape_cast %21 : vector<4x8xf32> to vector<4x1x8xf32>
    %23 = tpu.reciprocal %22 {approx = true} : vector<4x1x8xf32> -> vector<4x1x8xf32>
    %24 = vector.broadcast %23 : vector<4x1x8xf32> to vector<4x16x8xf32>
    %25 = arith.mulf %20, %24 : vector<4x16x8xf32>
    %26 = arith.truncf %25 : vector<4x16x8xf32> to vector<4x16x8xbf16>
    %27 = arith.truncf %15 : vector<4x16x128xf32> to vector<4x16x128xbf16>
    %cst_15 = arith.constant dense<0.000000e+00> : vector<4x8x128xf32>
    %28 = tpu.matmul %26, %27, %cst_15 {dimension_numbers = #tpu.dot_dimension_numbers<[1], [1], [2], [2], [0, 0, 0, 2, 1, 2], [0], [0]>} : vector<4x16x8xbf16>, vector<4x16x128xbf16>, vector<4x8x128xf32> -> vector<4x8x128xf32>
    %c0_16 = arith.constant 0 : index
    %c0_17 = arith.constant 0 : index
    %c0_18 = arith.constant 0 : index
    %29 = vector.load %arg6[%c0_16, %c0_17, %c0_18] : memref<4x8x128xf32, #tpu.memory_space<vmem>>, vector<4x8x128xf32>
    tpu.vector_store %arg6[%c0_16, %c0_17, %c0_18], %28 {strides = array<i32>} : memref<4x8x128xf32, #tpu.memory_space<vmem>>, vector<4x8x128xf32>,
    return
  }
  func.func @transform_0(%arg0: i32) -> (i32, i32, i32) {
    %c0_i32 = arith.constant 0 : i32
    %c0_i32_0 = arith.constant 0 : i32
    %c0_i32_1 = arith.constant 0 : i32
    return %c0_i32, %arg0, %c0_i32_0 : i32, i32, i32
  }
  func.func @transform_1(%arg0: i32) -> (i32, i32) {
    %c0_i32 = arith.constant 0 : i32
    %c0_i32_0 = arith.constant 0 : i32
    %c0_i32_1 = arith.constant 0 : i32
    return %c0_i32, %c0_i32_0 : i32, i32
  }
  func.func @transform_2(%arg0: i32) -> (i32, i32) {
    %c0_i32 = arith.constant 0 : i32
    %c0_i32_0 = arith.constant 0 : i32
    %c0_i32_1 = arith.constant 0 : i32
    return %c0_i32, %c0_i32_0 : i32, i32
  }
  func.func @transform_3(%arg0: i32) -> (i32, i32) {
    %c0_i32 = arith.constant 0 : i32
    %c0_i32_0 = arith.constant 0 : i32
    %c0_i32_1 = arith.constant 0 : i32
    return %c0_i32, %c0_i32_0 : i32, i32
  }
  func.func @transform_4(%arg0: i32) -> (i32, i32) {
    %c0_i32 = arith.constant 0 : i32
    %c0_i32_0 = arith.constant 0 : i32
    %c0_i32_1 = arith.constant 0 : i32
    return %c0_i32, %c0_i32_0 : i32, i32
  }
  func.func @transform_5(%arg0: i32) -> (i32, i32, i32) {
    %c0_i32 = arith.constant 0 : i32
    %c0_i32_0 = arith.constant 0 : i32
    %c0_i32_1 = arith.constant 0 : i32
    return %arg0, %c0_i32, %c0_i32_0 : i32, i32, i32
  }
}

</mosaic_0001>

<bundles_post_ra>
// kernel: tpu_custom_call.1
= control target key start
LH: loop header
LB: loop body
LE: loop exit
PB: predicated region body
PF: predicated region fallthrough
CT: control target
= control target key end

     0   :  { %10 = vsyncpa [#allocation4], 0  ;;  %s1398_s0 = inlined_call_operand.vmem [shape: bf16[2,512,64], index: 0, kind: input, shape index: {}]   ;;  %s1399_s1 = inlined_call_operand.vmem [shape: bf16[64,8], index: 1, kind: input, shape index: {}]   ;;  %s1400_s2 = inlined_call_operand.vmem [shape: f32[1,8], index: 2, kind: input, shape index: {}]   ;;  %s1401_s3 = inlined_call_operand.vmem [shape: bf16[64,128], index: 3, kind: input, shape index: {}]   ;;  %s1402_s4 = inlined_call_operand.vmem [shape: f32[1,128], index: 4, kind: input, shape index: {}]   ;;  %s1403_s5 = inlined_call_operand.hbm [shape: f32[32,8,128], index: 5, kind: output, shape index: {}]  }
   0x1   :  { %12 = vsyncpa [#allocation4 + $0x1], 0  ;;  %s1226_s18 = smov 0   ;;  %s1228_s19 = smov 0  }
   0x2   :  { %s1230_s20 = smov 0   ;;  %s1232_s21 = smov 0  }
   0x3 LB: > { %s931_s22 = sadd.s32 4294967295, %s1192_s21   ;;  %s932_s23 = sadd.s32 4294967294, %s1192_s21   ;;  %s1192_s21 = sphi %s1232_s21, %s1409_s21   ;;  %s1188_s20 = sphi %s1230_s20, %s1408_s20   ;;  %s1184_s19 = sphi %s1228_s19, %s1407_s19   ;;  %s1180_s18 = sphi %s1226_s18, %s1406_s18  }
   0x4   : > { %s1249_s24 = sadd.s32 1, %s1192_s21   ;;  %s25_s25 = sadd.s32 1, %s1188_s20 }
   0x5   : > { %s22_s26 = ssub.s32 %s1192_s21, %s1249_s24  ;;  %p32_p0 = scmp.ne.s32.totalorder %s1188_s20, %s1184_s19 }
   0x6   : > { %p23_p1 = scmp.eq.s32.totalorder %s22_s26, 0  ;;  %p33_p2 = scmp.eq.s32.totalorder %s1192_s21, 0 }
   0x7   : > { %p146_p3 = scmp.eq.s32.totalorder %s931_s22, 7  ;;  %p151_p4 = scmp.ne.s32.totalorder %s1184_s19, %s1180_s18 }
   0x8   : > { %s1262_s27 = scalar_select %p23_p1, %s1188_s20, %s25_s25  }
   0x9   : > { %p34_p5 = por %p33_p2, %p32_p0  ;;  %p1264_p6 = por %p146_p3, %p32_p0 }
   0xa   : > { %p152_p7 = scmp.eq.s32.totalorder %s932_s23, 7  ;;  %p934_p9 = scmp.ge.s32.totalorder %s1192_s21, 8 }
   0xc   : > { %p1268_p8 = por %p152_p7, %p151_p4  ;;  %180 = sbr.rel (%p934_p9) target bundleno = 29 (0x1d), region = 32 }
  0x11   : > { %183 = sbr.rel (!%p34_p5) target bundleno = 29 (0x1d), region = 36  ;;  %s185_s30 = sand.u32 (%p34_p5), 1, %s1188_s20  }
  0x12   : > { %s1030_s6 = sshll.u32 (%p34_p5), %s1192_s21, 5  ;;  %s935_s7 = sshll.u32 (%p34_p5), %s185_s30, 6 }
  0x13   : > { %s190_s10 = scalar_lea.vmem (%p34_p5), %s1398_s0, %s1030_s6  ;;  %s187_s11 = scalar_lea.vmem (%p34_p5), [#allocation2], %s935_s7 }
  0x14   : > { %v207_v0 = vld [vmem:[%s190_s10] sm:$0xff] (%p34_p5)   ;;  %v211_v1 = vld [vmem:[%s190_s10 + $0x8] sm:$0xff] (%p34_p5)   ;;  %v215_v2 = vld [vmem:[%s190_s10 + $0x10] sm:$0xff] (%p34_p5)  }
  0x15   : > { %208 = vst [vmem:[%s187_s11] sm:$0xff] (%p34_p5), %v207_v0   ;;  %v219_v3 = vld [vmem:[%s190_s10 + $0x18] sm:$0xff] (%p34_p5)   ;;  %v223_v4 = vld [vmem:[%s190_s10 + $0x100] sm:$0xff] (%p34_p5)   ;;  %v227_v5 = vld [vmem:[%s190_s10 + $0x108] sm:$0xff] (%p34_p5)  }
  0x16   : > { %212 = vst [vmem:[%s187_s11 + $0x8] sm:$0xff] %v211_v1   ;;  %v231_v6 = vld [vmem:[%s190_s10 + $0x110] sm:$0xff]   ;;  %v235_v7 = vld [vmem:[%s190_s10 + $0x118] sm:$0xff]  }
  0x17   : > { %216 = vst [vmem:[%s187_s11 + $0x10] sm:$0xff] %v215_v2  }
  0x18   : > { %220 = vst [vmem:[%s187_s11 + $0x18] sm:$0xff] %v219_v3  }
  0x19   : > { %224 = vst [vmem:[%s187_s11 + $0x20] sm:$0xff] %v223_v4  }
  0x1a   : > { %228 = vst [vmem:[%s187_s11 + $0x28] sm:$0xff] %v227_v5  }
  0x1b   : > { %232 = vst [vmem:[%s187_s11 + $0x30] sm:$0xff] %v231_v6  }
  0x1c   : > { %236 = vst [vmem:[%s187_s11 + $0x38] sm:$0xff] %v235_v7  }
  0x1d PF: > { %p938_p10 = scmp.ge.s32.totalorder %s1192_s21, 1  ;;  %p293_p11 = scmp.lt.s32.totalorder %s1192_s21, 9 }
  0x1f   : > { %p294_p12 = pnand %p938_p10, %p293_p11 }
  0x20   : > { %s1287_s16 = sand.u32 (!%p294_p12), 1, %s1184_s19   ;;  %s1150_s17 = scalar_lea.hbm (!%p294_p12), %s1403_s5, 256 }
  0x21   : > { %297 = sbr.rel (%p294_p12) target bundleno = 600 (0x258), region = 77  ;;  %s939_s25 = sshll.u32 (!%p294_p12), %s1287_s16, 6 }
  0x22   : > { %s1296_s6 = scalar_lea.vmem (!%p294_p12), [#allocation2], %s939_s25  ;;  %s940_s26 = sshll.u32 (!%p294_p12), %s1287_s16, 5 }
  0x23   : > { %s326_s30 = scalar_lea.vmem (!%p294_p12), [#allocation3], %s940_s26  ;;  %s849_s12 = scalar_lea.sflag (!%p294_p12), [#allocation4], %s1287_s16 }
  0x24   : > { %s861_s10 = sshll.u32 (!%p294_p12), %s326_s30, 4  ;;  %s862_s10 = int_to_ptr.vmem [resolvable:$true] %s861_s10 }
  0x26   : > { %v1042_v8 = vld [vmem:[%s1399_s1 + $0x18] sm:$0xff]  ;;  %v1041_v9 = vld [vmem:[%s1399_s1 + $0x10] sm:$0xff]  ;;  %v1040_v10 = vld [vmem:[%s1399_s1 + $0x8] sm:$0xff]  ;;  %vm403_vm0 = vcmask 523264   ;;  %vm542_vm1 = vcmask 64512   ;;  %vm695_vm2 = vcmask 130048  }
  0x27   : > { %420 = vmatpush.bf16.msra.mxu0 %v1042_v8  ;;  %1048 = vmatpush.bf16.msra.mxu2 %v1042_v8  ;;  %v1039_v11 = vld [vmem:[%s1399_s1] sm:$0xff]  ;;  %v1034_v13 = vld [vmem:[%s1296_s6 + $0x18] sm:$0xff]  ;;  %v1032_v14 = vld [vmem:[%s1296_s6 + $0x8] sm:$0xff] }
  0x28   : > { %v1031_v12 = vld [vmem:[%s1296_s6] sm:$0xff]  ;;  %v1033_v15 = vld [vmem:[%s1296_s6 + $0x10] sm:$0xff] }
  0x29   : > { %v1104_v17 = vld [vmem:[%s1400_s2] ss:$0 sm:$0xff] }
  0x2b   : > { %421 = vmatpush.bf16.msra.mxu0 %v1041_v9  ;;  %1049 = vmatpush.bf16.msra.mxu2 %v1041_v9 }
  0x2f   : > { %422 = vmatpush.bf16.msra.mxu0 %v1040_v10  ;;  %1050 = vmatpush.bf16.msra.mxu2 %v1040_v10 }
  0x33   : > { %423 = vmatpush.bf16.msra.mxu0 %v1039_v11  ;;  %1051 = vmatpush.bf16.msra.mxu2 %v1039_v11 }
  0x36   : > { %981 = vmatmul.msk.bf16.vlgmr.msra.gmra.mxu0 %vm403_vm0, %v1031_v12  ;;  %984 = vmatmul.msk.bf16.vlgmr.msra.gmra.mxu2 %vm403_vm0, %v1034_v13 }
  0x46   : > { %982 = vmatmul.msk.bf16.gmra.mxu0 %vm403_vm0, %v1032_v14 }
  0x56   : > { %983 = vmatmul.msk.bf16.gmra.mxu0 %vm403_vm0, %v1033_v15 }
  0xb3   : > { %v425_v16 = vpop.f32.mrf.mxu0 }
  0xb4   : > { %v426_v19 = vadd.f32 %v1104_v17, %v425_v16 }
  0xb6   : > { %v543_v22 = vsel %vm542_vm1, %v426_v19, -inf }
  0xb9   : > { %v440_v18 = vpop.f32.mrf.mxu2 }
  0xba   : > { %v441_v23 = vadd.f32 %v1104_v17, %v440_v18 }
  0xbb   : > { %v427_v20 = vpop.f32.mrf.mxu0 }
  0xbc   : > { %v428_v21 = vadd.f32 %v1104_v17, %v427_v20  ;;  %v570_v28 = vsel %vm542_vm1, %v441_v23, -inf }
  0xbe   : > { %v544_v24 = vsel %vm542_vm1, %v428_v21, -inf }
  0xbf   : > { %v545_v25 = vmax.f32 %v543_v22, %v544_v24  ;;  %v1046_v24 = vld [vmem:[%s1401_s3 + $0x18] sm:$0xff] }
  0xc0   : > { %517 = vmatpush.bf16.msra.mxu1 %v1046_v24  ;;  %1052 = vmatpush.bf16.msra.mxu3 %v1046_v24 }
  0xc1   : > { %v546_v26 = vrot.slane %v545_v25, 4  ;;  %v442_v27 = vpop.f32.mrf.mxu2 }
  0xc2   : > { %v443_v29 = vadd.f32 %v1104_v17, %v442_v27  ;;  %v1045_v27 = vld [vmem:[%s1401_s3 + $0x10] sm:$0xff] }
  0xc3   : > { %v547_v30 = vmax.f32 %v545_v25, %v546_v26  ;;  %v430_v31 = vpop.f32.mrf.mxu0 }
  0xc4   : > { %v571_v32 = vsel %vm542_vm1, %v443_v29, -inf  ;;  %v431_v39 = vadd.f32 %v1104_v17, %v430_v31  ;;  %518 = vmatpush.bf16.msra.mxu1 %v1045_v27  ;;  %1053 = vmatpush.bf16.msra.mxu3 %v1045_v27 }
  0xc5   : > { %v548_v33 = vrot.slane %v547_v30, 2  ;;  %v572_v34 = vmax.f32 %v570_v28, %v571_v32 }
  0xc6   : > { %v552_v47 = vsel %vm542_vm1, %v431_v39, -inf }
  0xc7   : > { %v549_v35 = vmax.f32 %v547_v30, %v548_v33  ;;  %v573_v36 = vrot.slane %v572_v34, 4 }
  0xc9   : > { %v550_v37 = vrot.slane %v549_v35, 1  ;;  %v574_v38 = vmax.f32 %v572_v34, %v573_v36 }
  0xcb   : > { %v551_v40 = vmax.f32 %v549_v35, %v550_v37  ;;  %v575_v41 = vrot.slane %v574_v38, 2  ;;  %v432_v42 = vpop.f32.mrf.mxu0  ;;  %v1044_v35 = vld [vmem:[%s1401_s3 + $0x8] sm:$0xff] }
  0xcc   : > { %v433_v43 = vadd.f32 %v1104_v17, %v432_v42  ;;  %519 = vmatpush.bf16.msra.mxu1 %v1044_v35  ;;  %1054 = vmatpush.bf16.msra.mxu3 %v1044_v35 }
  0xcd   : > { %v579_v44 = vsub.f32 %v426_v19, %v551_v40  ;;  %v580_v45 = vsub.f32 %v428_v21, %v551_v40  ;;  %v576_v46 = vmax.f32 %v574_v38, %v575_v41 }
  0xce   : > { %v553_v48 = vsel %vm542_vm1, %v433_v43, -inf }
  0xcf   : > { %v587_v49 = vmul.f32 1.442695, %v579_v44  ;;  %v589_v50 = vmul.f32 1.442695, %v580_v45  ;;  %v577_v51 = vrot.slane %v576_v46, 1  ;;  %v554_v52 = vmax.f32 %v552_v47, %v553_v48 }
  0xd1   : > { %1106 = vpow2.f32 %v587_v49  ;;  %v578_v53 = vmax.f32 %v576_v46, %v577_v51  ;;  %v555_v54 = vrot.slane %v554_v52, 4 }
  0xd2   : > { %1108 = vpow2.f32 %v589_v50  ;;  %v1035_v50 = vld [vmem:[%s1296_s6 + $0x20] sm:$0xff] }
  0xd3   : > { %v585_v55 = vsub.f32 %v441_v23, %v578_v53  ;;  %v586_v56 = vsub.f32 %v443_v29, %v578_v53  ;;  %v556_v57 = vmax.f32 %v554_v52, %v555_v54  ;;  %v435_v58 = vpop.f32.mrf.mxu0 }
  0xd4   : > { %v436_v5 = vadd.f32 %v1104_v17, %v435_v58 }
  0xd5   : > { %v599_v59 = vmul.f32 1.442695, %v585_v55  ;;  %v601_v60 = vmul.f32 1.442695, %v586_v56  ;;  %v557_v61 = vrot.slane %v556_v57, 2 }
  0xd6   : > { %v561_v15 = vsel %vm542_vm1, %v436_v5, -inf }
  0xd7   : > { %v1315_v62 = vpop.eup %1106  ;;  %1110 = vpow2.f32 %v599_v59  ;;  %v558_v63 = vmax.f32 %v556_v57, %v557_v61  ;;  %v1038_v59 = vld [vmem:[%s1296_s6 + $0x38] sm:$0xff] }
  0xd8   : > { %v1317_v0 = vpop.eup %1108  ;;  %v603_v1 = vsel %vm542_vm1, %v1315_v62, 0.0  ;;  %1112 = vpow2.f32 %v601_v60 }
  0xd9   : > { %v604_v2 = vsel %vm542_vm1, %v1317_v0, 0.0  ;;  %v559_v3 = vrot.slane %v558_v63, 1 }
  0xda   : > { %v605_v4 = vadd.f32 %v604_v2, %v603_v1 }
  0xdb   : > { %v560_v6 = vmax.f32 %v558_v63, %v559_v3  ;;  %v437_v7 = vpop.f32.mrf.mxu0 }
  0xdc   : > { %v606_v8 = vrot.slane %v605_v4, 4  ;;  %v438_v9 = vadd.f32 %v1104_v17, %v437_v7 }
  0xdd   : > { %v1323_v10 = vpop.eup %1110  ;;  %v581_v11 = vsub.f32 %v431_v39, %v560_v6  ;;  %v582_v12 = vsub.f32 %v433_v43, %v560_v6  ;;  %v1043_v43 = vld [vmem:[%s1401_s3] sm:$0xff] }
  0xde   : > { %v1325_v13 = vpop.eup %1112  ;;  %v607_v14 = vadd.f32 %v606_v8, %v605_v4  ;;  %v562_v16 = vsel %vm542_vm1, %v438_v9, -inf  ;;  %v630_v22 = vsel %vm542_vm1, %v1323_v10, 0.0  ;;  %520 = vmatpush.bf16.msra.mxu1 %v1043_v43  ;;  %1055 = vmatpush.bf16.msra.mxu3 %v1043_v43 }
  0xdf   : > { %v591_v18 = vmul.f32 1.442695, %v581_v11  ;;  %v593_v19 = vmul.f32 1.442695, %v582_v12  ;;  %v563_v20 = vmax.f32 %v561_v15, %v562_v16  ;;  %v631_v17 = vsel %vm542_vm1, %v1325_v13, 0.0  ;;  %v1036_v15 = vld [vmem:[%s1296_s6 + $0x28] sm:$0xff] }
  0xe0   : > { %v608_v21 = vrot.slane %v607_v14, 2  ;;  %v632_v26 = vadd.f32 %v631_v17, %v630_v22 }
  0xe1   : > { %1114 = vpow2.f32 %v591_v18  ;;  %v564_v23 = vrot.slane %v563_v20, 4  ;;  %1017 = vmatmul.msk.bf16.vlgmr.msra.gmra.mxu1 %vm403_vm0, %v1035_v50  ;;  %1020 = vmatmul.msk.bf16.vlgmr.msra.gmra.mxu3 %vm403_vm0, %v1038_v59 }
  0xe2   : > { %1116 = vpow2.f32 %v593_v19  ;;  %v609_v28 = vadd.f32 %v608_v21, %v607_v14  ;;  %v633_v33 = vrot.slane %v632_v26, 4 }
  0xe3   : > { %v565_v25 = vmax.f32 %v563_v20, %v564_v23 }
  0xe4   : > { %v610_v36 = vrot.slane %v609_v28, 1  ;;  %v634_v41 = vadd.f32 %v633_v33, %v632_v26 }
  0xe5   : > { %v566_v29 = vrot.slane %v565_v25, 2 }
  0xe6   : > { %v611_v44 = vadd.f32 %v610_v36, %v609_v28  ;;  %v635_v51 = vrot.slane %v634_v41, 2 }
  0xe7   : > { %v1115_v30 = vpop.eup %1114  ;;  %v567_v31 = vmax.f32 %v565_v25, %v566_v29 }
  0xe8   : > { %v1117_v32 = vpop.eup %1116  ;;  %v612_v34 = vsel %vm542_vm1, %v1115_v30, 0.0  ;;  %1118 = vrcp.f32 %v611_v44  ;;  %v636_v54 = vadd.f32 %v635_v51, %v634_v41 }
  0xe9   : > { %v613_v37 = vsel %vm542_vm1, %v1117_v32, 0.0  ;;  %v568_v38 = vrot.slane %v567_v31, 1 }
  0xea   : > { %v614_v39 = vadd.f32 %v613_v37, %v612_v34  ;;  %v637_v63 = vrot.slane %v636_v54, 1  ;;  %v1037_v34 = vld [vmem:[%s1296_s6 + $0x30] sm:$0xff]  ;;  %s1047_s6 = sshll.u32 %s931_s22, 5 }
  0xeb   : > { %v569_v40 = vmax.f32 %v567_v31, %v568_v38  ;;  %s860_s9 = scalar_lea.hbm %s1403_s5, %s1047_s6 }
  0xec   : > { %v615_v42 = vrot.slane %v614_v39, 4  ;;  %v638_v6 = vadd.f32 %v637_v63, %v636_v54  ;;  %s863_s11 = sshll.u32 %s860_s9, 4  ;;  %s864_s11 = int_to_ptr.hbm [resolvable:$true] %s863_s11 }
  0xed   : > { %v583_v45 = vsub.f32 %v436_v5, %v569_v40  ;;  %v584_v46 = vsub.f32 %v438_v9, %v569_v40  ;;  %s1144_s13 = sshra.s32 %s864_s11, 4  ;;  %s1145_s13 = int_to_ptr.hbm [resolvable:$true] %s1144_s13 }
  0xee   : > { %v616_v47 = vadd.f32 %v615_v42, %v614_v39  ;;  %v1119_v56 = vpop.eup %1118  ;;  %s1146_s14 = scalar_lea.hbm %s1145_s13, 32  ;;  %p1151_p2 = scmp.lt.s32.totalorder %s1145_s13, %s1403_s5 }
  0xef   : > { %v595_v48 = vmul.f32 1.442695, %v583_v45  ;;  %v597_v49 = vmul.f32 1.442695, %v584_v46  ;;  %v643_v2 = vmul.f32 %v1119_v56, %v1315_v62  ;;  %v644_v3 = vmul.f32 %v1119_v56, %v1317_v0  ;;  %p1147_p13 = scmp.ne.s32.totalorder %s1145_s13, %s1146_s14  ;;  %p1152_p3 = scmp.lt.s32.totalorder %s1150_s17, %s1146_s14 }
  0xf0   : > { %v617_v52 = vrot.slane %v616_v47, 2 }
  0xf1   : > { %1120 = vpow2.f32 %v595_v48  ;;  %v651_v7 = vpack.c.bf16 %v643_v2, %v643_v2  ;;  %v652_v8 = vpack.c.bf16 %v644_v3, %v644_v3  ;;  %1018 = vmatmul.msk.bf16.gmra.mxu1 %vm403_vm0, %v1036_v15  ;;  %p1148_p0 = pnand %p1147_p13, %p1264_p6  ;;  %p1153_p4 = por %p1152_p3, %p1151_p2 }
  0xf2   : > { %1122 = vpow2.f32 %v597_v49  ;;  %v618_v53 = vadd.f32 %v617_v52, %v616_v47 }
  0xf3   : > { %v669_v20 = vunpack.c.l.b16 %v651_v7  ;;  %v670_v62 = vunpack.c.l.b16 %v652_v8  ;;  %p1149_p1 = pneg %p1148_p0 }
  0xf4   : > { %v619_v55 = vrot.slane %v618_v53, 1 }
  0xf5   : > { %v671_v23 = vpack.c.b16 %v670_v62, %v669_v20  ;;  %p1154_p5 = pnand %p1153_p4, %p1149_p1 }
  0xf6   : > { %v620_v57 = vadd.f32 %v619_v55, %v618_v53 }
  0xf7   : > { %v1121_v58 = vpop.eup %1120 }
  0xf8   : > { %v1123_v60 = vpop.eup %1122  ;;  %v621_v61 = vsel %vm542_vm1, %v1121_v58, 0.0  ;;  %1124 = vrcp.f32 %v620_v57 }
  0xf9   : > { %v622_v1 = vsel %vm542_vm1, %v1123_v60, 0.0  ;;  %1126 = vrcp.f32 %v638_v6 }
  0xfa   : > { %v623_v4 = vadd.f32 %v622_v1, %v621_v61 }
  0xfc   : > { %v624_v5 = vrot.slane %v623_v4, 4 }
  0xfe   : > { %v1125_v9 = vpop.eup %1124  ;;  %v625_v11 = vadd.f32 %v624_v5, %v623_v4 }
  0xff   : > { %v645_v12 = vmul.f32 %v1125_v9, %v1115_v30  ;;  %v646_v14 = vmul.f32 %v1125_v9, %v1117_v32  ;;  %v1127_v25 = vpop.eup %1126 }
 0x100   : > { %v626_v16 = vrot.slane %v625_v11, 2  ;;  %v649_v27 = vmul.f32 %v1127_v25, %v1323_v10  ;;  %v650_v28 = vmul.f32 %v1127_v25, %v1325_v13  ;;  %v1105_v10 = vld [vmem:[%s1402_s4] ss:$0 sm:$0xff] }
 0x101   : > { %v653_v18 = vpack.c.bf16 %v645_v12, %v645_v12  ;;  %v654_v19 = vpack.c.bf16 %v646_v14, %v646_v14  ;;  %1019 = vmatmul.msk.bf16.gmra.mxu1 %vm403_vm0, %v1037_v34 }
 0x102   : > { %v627_v21 = vadd.f32 %v626_v16, %v625_v11  ;;  %v657_v29 = vpack.c.bf16 %v649_v27, %v649_v27  ;;  %v658_v30 = vpack.c.bf16 %v650_v28, %v650_v28 }
 0x103   : > { %v714_v0 = vunpack.c.l.b16 %v653_v18  ;;  %v715_v22 = vunpack.c.l.b16 %v654_v19 }
 0x104   : > { %v628_v17 = vrot.slane %v627_v21, 1  ;;  %v802_v37 = vunpack.c.l.b16 %v657_v29  ;;  %v803_v38 = vunpack.c.l.b16 %v658_v30 }
 0x105   : > { %v716_v24 = vpack.c.b16 %v715_v22, %v714_v0 }
 0x106   : > { %v629_v26 = vadd.f32 %v628_v17, %v627_v21  ;;  %v804_v42 = vpack.c.b16 %v803_v38, %v802_v37 }
 0x107   : > { %1098 = vxpose.binary.xlu0.c.b16.start.end [1/2] (short) (narrow) %v716_v24, %v671_v23, 16 }
 0x108   : > { %1128 = vrcp.f32 %v629_v26 }
 0x10e   : > { %v1129_v31 = vpop.eup %1128 }
 0x10f   : > { %v647_v32 = vmul.f32 %v1129_v31, %v1121_v58  ;;  %v648_v33 = vmul.f32 %v1129_v31, %v1123_v60 }
 0x111   : > { %v655_v35 = vpack.c.bf16 %v647_v32, %v647_v32  ;;  %v656_v36 = vpack.c.bf16 %v648_v33, %v648_v33 }
 0x113   : > { %v758_v39 = vunpack.c.l.b16 %v655_v35  ;;  %v759_v40 = vunpack.c.l.b16 %v656_v36 }
 0x115   : > { %v760_v41 = vpack.c.b16 %v759_v40, %v758_v39 }
 0x117   : > { %1101 = vxpose.binary.xlu0.c.b16.start.end [1/2] (short) (narrow) %v804_v42, %v760_v41, 16 }
 0x15e   : > { %v522_v13 = vpop.f32.mrf.mxu1 }
 0x15f   : > { %v523_v43 = vadd.f32 %v1105_v10, %v522_v13 }
 0x161   : > { %v659_v44 = vpack.c.bf16 %v523_v43, %v523_v43 }
 0x163   : > { %v691_v47 = vunpack.c.l.b16 %v659_v44 }
 0x164   : > { %v537_v49 = vpop.f32.mrf.mxu3 }
 0x165   : > { %v538_v53 = vadd.f32 %v1105_v10, %v537_v49 }
 0x166   : > { %v524_v45 = vpop.f32.mrf.mxu1 }
 0x167   : > { %v525_v46 = vadd.f32 %v1105_v10, %v524_v45  ;;  %v665_v57 = vpack.c.bf16 %v538_v53, %v538_v53 }
 0x169   : > { %v660_v48 = vpack.c.bf16 %v525_v46, %v525_v46  ;;  %v824_v63 = vunpack.c.l.b16 %v665_v57 }
 0x16b   : > { %v692_v50 = vunpack.c.l.b16 %v660_v48 }
 0x16c   : > { %v539_v55 = vpop.f32.mrf.mxu3 }
 0x16d   : > { %v693_v51 = vpack.c.b16 %v692_v50, %v691_v47  ;;  %v540_v56 = vadd.f32 %v1105_v10, %v539_v55 }
 0x16e   : > { %v527_v52 = vpop.f32.mrf.mxu1 }
 0x16f   : > { %706 = vmatpush.bf16.msrb.mxu2 %v693_v51  ;;  %v528_v54 = vadd.f32 %v1105_v10, %v527_v52  ;;  %v666_v59 = vpack.c.bf16 %v540_v56, %v540_v56 }
 0x171   : > { %v661_v58 = vpack.c.bf16 %v528_v54, %v528_v54  ;;  %v825_v1 = vunpack.c.l.b16 %v666_v59 }
 0x173   : > { %v736_v2 = vunpack.c.l.b16 %v661_v58  ;;  %v826_v5 = vpack.c.b16 %v825_v1, %v824_v63 }
 0x176   : > { %v529_v60 = vpop.f32.mrf.mxu1 }
 0x177   : > { %v530_v61 = vadd.f32 %v1105_v10, %v529_v60 }
 0x179   : > { %v662_v3 = vpack.c.bf16 %v530_v61, %v530_v61 }
 0x17b   : > { %v737_v4 = vunpack.c.l.b16 %v662_v3 }
 0x17d   : > { %v738_v6 = vpack.c.b16 %v737_v4, %v736_v2 }
 0x17e   : > { %v532_v7 = vpop.f32.mrf.mxu1 }
 0x17f   : > { %750 = vmatpush.bf16.msrb.mxu3 %v738_v6  ;;  %v533_v8 = vadd.f32 %v1105_v10, %v532_v7 }
 0x181   : > { %v663_v9 = vpack.c.bf16 %v533_v8, %v533_v8 }
 0x183   : > { %838 = vmatpush.bf16.msra.mxu3 %v826_v5  ;;  %v780_v14 = vunpack.c.l.b16 %v663_v9 }
 0x186   : > { %v534_v11 = vpop.f32.mrf.mxu1 }
 0x187   : > { %v535_v12 = vadd.f32 %v1105_v10, %v534_v11 }
 0x189   : > { %v664_v15 = vpack.c.bf16 %v535_v12, %v535_v12 }
 0x18b   : > { %v781_v16 = vunpack.c.l.b16 %v664_v15 }
 0x18d   : > { %v782_v18 = vpack.c.b16 %v781_v16, %v780_v14 }
 0x18f   : > { %794 = vmatpush.bf16.msra.mxu2 %v782_v18 }
 0x1b3   : > { %v1099_v19 = vpop.trf.xlu0 }
 0x1b4   : > { %1021 = vmatmul.msk.bf16.vlgmr.msrb.gmra.mxu2 %vm695_vm2, %v1099_v19 }
 0x1bb   : > { %v1100_v20 = vpop.trf.xlu0 }
 0x1bc   : > { %1022 = vmatmul.msk.bf16.vlgmr.msrb.gmra.mxu3 %vm695_vm2, %v1100_v20 }
 0x1c3   : > { %v1102_v62 = vpop.trf.xlu0 }
 0x1c4   : > { %1023 = vmatmul.msk.bf16.vlgmr.msra.gmra.mxu2 %vm695_vm2, %v1102_v62 }
 0x1cb   : > { %v1103_v21 = vpop.trf.xlu0 }
 0x1cc   : > { %1024 = vmatmul.msk.bf16.vlgmr.msra.gmra.mxu3 %vm695_vm2, %v1103_v21 }
 0x237   : > { %v708_v0 = vpop.f32.mrf.mxu2 }
 0x238   : > { %844 = vst [vmem:[%s326_s30] sm:$0xff] %v708_v0 }
 0x23f   : > { %v710_v22 = vpop.f32.mrf.mxu2  ;;  %v752_v17 = vpop.f32.mrf.mxu3 }
 0x240   : > { %845 = vst [vmem:[%s326_s30 + $0x8] sm:$0xff] %v752_v17 }
 0x247   : > { %v754_v23 = vpop.f32.mrf.mxu3  ;;  %v796_v24 = vpop.f32.mrf.mxu2 }
 0x248   : > { %846 = vst [vmem:[%s326_s30 + $0x10] sm:$0xff] %v796_v24 }
 0x24f   : > { %v798_v25 = vpop.f32.mrf.mxu2  ;;  %v840_v26 = vpop.f32.mrf.mxu3 }
 0x250   : > { %847 = vst [vmem:[%s326_s30 + $0x18] sm:$0xff] %v840_v26 }
 0x251   : > { %1157 = shalt.err (!%p1154_p5)
}
 0x252   : > { %s1194_s16 = smov 128   ;;  %s1195_s26 = smov 8  }
 0x253   : > { %1056 = dma.vmem_to_hbm [thread:$0]  (%p1264_p6), %s862_s10, 512, %s864_s11, %s849_s12, %s1194_s16, %s1194_s16, %s1195_s26  }
 0x257   : > { %v842_v27 = vpop.f32.mrf.mxu3 }
 0x258 PF: > { %p1062_p7 = scmp.ge.s32.totalorder %s1192_s21, 2  ;;  %s878_s30 = sand.u32 1, %s1180_s18  }
 0x259   : > { %s879_s6 = scalar_lea.sflag [#allocation4], %s878_s30 }
 0x25a   : > { %p1059_p9 = pnand %p1062_p7, %p1268_p8 }
 0x25c   : > { %p1060_p10 = pneg %p1059_p9 }
 0x25e   : > { %1175 = dma.done.wait (%p1060_p10), %s879_s6, 512  }
 0x25f   : > { %1177 = vsyncadd (%p1060_p10), %s879_s6, 4294966784  ;;  %p15_p11 = scmp.ge.s32.totalorder %s1249_s24, 10   ;;  %s1406_s18 = smov %s1184_s19 }
 0x260   : > { %s1407_s19 = smov %s1188_s20  ;;  %s1408_s20 = smov %s1262_s27 }
 0x261   : > { %s1409_s21 = smov %s1249_s24  ;;  %17 = sbr.rel (!%p15_p11) target bundleno = 3 (0x3), region = 122 }
 0x266   :  { %885 = vsyncpa [#allocation4], 1 }
 0x267   :  { %887 = vsyncpa [#allocation4 + $0x1], 1 }

</bundles_post_ra>
